<compile_context>
chip_gen: v6e
topology: v6e:2x2x1
jax: 0.10.0
libtpu: 0.0.40
codegen_flags: <defaults>
</compile_context>

<pallas_src>
import functools

import jax
import jax.numpy as jnp
from jax import lax
from jax.experimental import pallas as pl
from jax.experimental.pallas import tpu as pltpu


# Scoped VMEM budget requested from Mosaic.  Safe on v5e/v6e (128 MiB physical)
# and v7x (64 MiB physical per TensorCore).
VMEM_LIMIT = 48 * 1024 * 1024


# ----------------------------------------------------------------------------
# Tile-size helpers
# ----------------------------------------------------------------------------
def _row_tile(n, target=512):
    """Row tile for simple row-parallel kernels (multiple of 8 or full)."""
    if n <= target:
        return n
    for t in range(target - target % 8, 7, -8):
        if n % t == 0:
            return t
    return n


def _pick_dst_tile(n_dst, n_src, hf, *, vmem_limit=VMEM_LIMIT, max_tile=512):
    """Largest dst-row tile (multiple of 32, divides n_dst) whose double-buffered
    working set fits the VMEM budget.  Lower `max_tile` (e.g. 128) for v7x's
    64 MiB VMEM."""
    # Resident per grid step: full-src bf16 z block (double buffered) + el/er.
    resident = 2 * n_src * hf * 2 + 4 * n_src * max(hf, 8)
    # Per dst row: int8 adj row (double buffered) + f32 score/exp temporaries
    # over the full src axis + per-head output columns.
    per_row = 2 * n_src + 3 * n_src * 4 + 6 * hf * 4
    budget = max(vmem_limit - resident, 1 << 20)
    for t in (512, 256, 128, 64, 32):
        if t <= max_tile and t <= n_dst and n_dst % t == 0 and t * per_row <= budget:
            return t
    return n_dst  # small graphs: single full-height tile


# ----------------------------------------------------------------------------
# Kernel 1: per-type input projection (tiled, row-parallel)
# ----------------------------------------------------------------------------
def linear_kernel(x_ref, w_ref, b_ref, o_ref):
    o_ref[...] = (
        jnp.dot(x_ref[...], w_ref[...], preferred_element_type=jnp.float32)
        + b_ref[...]
    )


def linear(x, w, b, *, tile):
    n, din = x.shape
    dout = w.shape[1]
    return pl.pallas_call(
        linear_kernel,
        out_shape=jax.ShapeDtypeStruct((n, dout), jnp.float32),
        grid=(n // tile,),
        in_specs=[
            pl.BlockSpec((tile, din), lambda i: (i, 0)),
            pl.BlockSpec((din, dout), lambda i: (0, 0)),
            pl.BlockSpec((1, dout), lambda i: (0, 0)),
        ],
        out_specs=pl.BlockSpec((tile, dout), lambda i: (i, 0)),
        compiler_params=pltpu.CompilerParams(
            dimension_semantics=("parallel",), vmem_limit_bytes=VMEM_LIMIT),
    )(x, w, b.reshape(1, dout))


# ----------------------------------------------------------------------------
# Kernel 2: per-relation feature transform + attention score projections
#   z   = h @ W            (bf16 MXU, f32 accumulate; stored bf16 for reuse)
#   el  = z @ AL, er = z @ AR   (block-diagonal attention matrices -> all heads
#                                in a single MXU matmul per side)
# ----------------------------------------------------------------------------
def project_kernel(h_ref, w_ref, al_ref, ar_ref, z_ref, el_ref, er_ref):
    h = h_ref[...].astype(jnp.bfloat16)
    z = jnp.dot(h, w_ref[0], preferred_element_type=jnp.float32)      # (T, H*F)
    el_ref[0] = jnp.dot(z, al_ref[0], preferred_element_type=jnp.float32)  # (T, H)
    er_ref[0] = jnp.dot(z, ar_ref[0], preferred_element_type=jnp.float32)  # (T, H)
    z_ref[0] = z.astype(jnp.bfloat16)


def project_layer(h, W_all, AL_all, AR_all, *, num_heads, out_feats, tile):
    n, din = h.shape
    g = W_all.shape[0]
    hf = num_heads * out_feats
    return pl.pallas_call(
        project_kernel,
        out_shape=(
            jax.ShapeDtypeStruct((g, n, hf), jnp.bfloat16),
            jax.ShapeDtypeStruct((g, n, num_heads), jnp.float32),
            jax.ShapeDtypeStruct((g, n, num_heads), jnp.float32),
        ),
        grid=(g, n // tile),
        in_specs=[
            pl.BlockSpec((tile, din), lambda gi, i: (i, 0)),
            pl.BlockSpec((1, din, hf), lambda gi, i: (gi, 0, 0)),
            pl.BlockSpec((1, hf, num_heads), lambda gi, i: (gi, 0, 0)),
            pl.BlockSpec((1, hf, num_heads), lambda gi, i: (gi, 0, 0)),
        ],
        out_specs=(
            pl.BlockSpec((1, tile, hf), lambda gi, i: (gi, i, 0)),
            pl.BlockSpec((1, tile, num_heads), lambda gi, i: (gi, i, 0)),
            pl.BlockSpec((1, tile, num_heads), lambda gi, i: (gi, i, 0)),
        ),
        compiler_params=pltpu.CompilerParams(
            dimension_semantics=("parallel", "parallel"),
            vmem_limit_bytes=VMEM_LIMIT),
    )(h, W_all, AL_all, AR_all)


# ----------------------------------------------------------------------------
# Kernel 3: attention softmax + neighborhood aggregation + residual/bias/ELU
#           + fused cross-relation weighted combine.
#   grid = (dst_tiles ["parallel"], relations ["arbitrary" / reduction])
#   The output block is revisited across the relation axis -> VMEM accumulator.
# ----------------------------------------------------------------------------
def attend_kernel(*refs, num_heads, out_feats, negative_slope, apply_elu,
                  res_mode, mean_heads):
    if res_mode == "none":
        w_ref, adj_ref, z_ref, el_ref, er_ref, bias_ref, out_ref = refs
        h_ref = resw_ref = None
    elif res_mode == "identity":
        w_ref, adj_ref, z_ref, el_ref, er_ref, bias_ref, h_ref, out_ref = refs
        resw_ref = None
    else:  # "proj"
        (w_ref, adj_ref, z_ref, el_ref, er_ref, bias_ref, h_ref, resw_ref,
         out_ref) = refs

    g = pl.program_id(1)

    z_src = z_ref[0]                       # (N, H*F) bf16, full source axis
    el = el_ref[0]                         # (N, H)   f32, source scores
    er = er_ref[0]                         # (T, H)   f32, dest scores
    adj = adj_ref[0]                       # (T, N)   int8 adjacency rows
    bias = bias_ref[0]                     # (1, H*F) f32

    # Residual + bias base, computed once for all heads (specialized per layer).
    if res_mode == "none":
        base = bias
    elif res_mode == "identity":
        base = h_ref[...] + bias
    else:
        base = jnp.dot(h_ref[...].astype(jnp.bfloat16), resw_ref[0],
                       preferred_element_type=jnp.float32) + bias

    mask = adj > 0                         # hoisted out of the head loop

    head_out = []
    for hd in range(num_heads):
        lo = hd * out_feats
        hi = lo + out_feats
        # e[dst, src] = er[dst, hd] + el[src, hd]
        e = er[:, hd:hd + 1] + el[:, hd:hd + 1].T                     # (T, N)
        e = jnp.where(e >= 0, e, negative_slope * e)                  # leaky relu
        scores = jnp.where(mask, e, -1e30)
        m = jnp.max(scores, axis=-1, keepdims=True)
        p = jnp.exp(scores - m)
        denom = jnp.sum(p, axis=-1, keepdims=True)
        alpha = (p * pl.reciprocal(denom, approx=True)).astype(jnp.bfloat16)
        agg = jnp.dot(alpha, z_src[:, lo:hi],
                      preferred_element_type=jnp.float32)             # (T, F)
        rst = agg + base[:, lo:hi]
        if apply_elu:
            rst = jnp.where(rst > 0, rst, jnp.exp(rst) - 1.0)
        head_out.append(rst)

    if mean_heads:
        acc = head_out[0]
        for r in head_out[1:]:
            acc = acc + r
        tile_out = acc * jnp.float32(1.0 / num_heads)                 # (T, F)
    else:
        tile_out = jnp.concatenate(head_out, axis=-1)                 # (T, H*F)

    # Per-node weight of the current relation (one-hot select over G columns).
    w = w_ref[...]                                                    # (T, G)
    gcol = lax.broadcasted_iota(jnp.int32, w.shape, 1)
    wg = jnp.sum(jnp.where(gcol == g, w, 0.0), axis=1, keepdims=True)  # (T, 1)

    @pl.when(g == 0)
    def _():
        out_ref[...] = jnp.zeros_like(out_ref)

    out_ref[...] += wg * tile_out


def gat_combine_layer(h, z_all, el_all, er_all, adj_all, bias_all, w_node,
                      res_w_all, *, num_heads, out_feats, negative_slope,
                      apply_elu, res_mode, mean_heads, tile_dst):
    n, din = h.shape
    g = adj_all.shape[0]
    hf = num_heads * out_feats
    dout = out_feats if mean_heads else hf

    in_specs = [
        pl.BlockSpec((tile_dst, g), lambda i, gi: (i, 0)),              # w_node
        pl.BlockSpec((1, tile_dst, n), lambda i, gi: (gi, i, 0)),       # adj (int8)
        pl.BlockSpec((1, n, hf), lambda i, gi: (gi, 0, 0)),             # z (bf16)
        pl.BlockSpec((1, n, num_heads), lambda i, gi: (gi, 0, 0)),      # el (src)
        pl.BlockSpec((1, tile_dst, num_heads), lambda i, gi: (gi, i, 0)),  # er (dst)
        pl.BlockSpec((1, 1, hf), lambda i, gi: (gi, 0, 0)),             # bias
    ]
    operands = [w_node, adj_all, z_all, el_all, er_all, bias_all]
    if res_mode in ("identity", "proj"):
        in_specs.append(pl.BlockSpec((tile_dst, din), lambda i, gi: (i, 0)))
        operands.append(h)
    if res_mode == "proj":
        in_specs.append(pl.BlockSpec((1, din, hf), lambda i, gi: (gi, 0, 0)))
        operands.append(res_w_all)

    kernel = functools.partial(
        attend_kernel, num_heads=num_heads, out_feats=out_feats,
        negative_slope=negative_slope, apply_elu=apply_elu,
        res_mode=res_mode, mean_heads=mean_heads)

    return pl.pallas_call(
        kernel,
        out_shape=jax.ShapeDtypeStruct((n, dout), jnp.float32),
        grid=(n // tile_dst, g),
        in_specs=in_specs,
        out_specs=pl.BlockSpec((tile_dst, dout), lambda i, gi: (i, 0)),
        compiler_params=pltpu.CompilerParams(
            dimension_semantics=("parallel", "arbitrary"),
            vmem_limit_bytes=VMEM_LIMIT),
    )(*operands)


# ----------------------------------------------------------------------------
# Parameter packing glue (per layer, per relation -> stacked arrays)
# ----------------------------------------------------------------------------
def _block_diag_attn(a):
    """(H, F) attention vector -> (H*F, H) block-diagonal matrix so that all
    per-head scores come from one MXU matmul (z @ A)."""
    h, f = a.shape
    eye = jnp.eye(h, dtype=a.dtype)
    return (a[:, :, None] * eye[:, None, :]).reshape(h * f, h)


def _pack_layer(gat_params, l, num_heads, out_feats, din):
    plist = [gp[l] for gp in gat_params]
    hf = num_heads * out_feats
    w_all = jnp.stack([p["W"] for p in plist], 0).astype(jnp.bfloat16)
    al_all = jnp.stack([_block_diag_attn(p["al"]) for p in plist], 0)
    ar_all = jnp.stack([_block_diag_attn(p["ar"]) for p in plist], 0)
    bias_all = jnp.stack([p["bias"].reshape(1, hf) for p in plist], 0)
    if l == 0:
        res_mode, res_w_all = "none", None          # residual=False: skip entirely
    elif din == hf:
        res_mode, res_w_all = "identity", None      # identity residual: just add h
    else:
        res_mode = "proj"                            # real res_fc projection
        res_w_all = jnp.stack([p["res_w"] for p in plist], 0).astype(jnp.bfloat16)
    return dict(W=w_all, AL=al_all, AR=ar_all, bias=bias_all,
                res_mode=res_mode, res_w=res_w_all)


# ----------------------------------------------------------------------------
# RGAT forward
# ----------------------------------------------------------------------------
def rgat_forward(features_list, adjs, params, cfg, *, max_dst_tile=512):
    nums = [f.shape[0] for f in features_list]
    n_types, n_graphs = len(features_list), len(adjs)
    num_layers, heads = cfg["num_layers"], cfg["heads"]
    hid, num_classes, slope = (cfg["num_hidden"], cfg["num_classes"],
                               cfg["negative_slope"])
    n_nodes = sum(nums)

    # softmax over relation axis of the (ntypes, L+1, ngraphs) mixing weights (glue)
    w_soft = jax.nn.softmax(params["rel_weights"], axis=2)
    type_id = jnp.concatenate(
        [jnp.full((nums[k],), k, dtype=jnp.int32) for k in range(n_types)], axis=0)

    # per-type input projections (tiled Pallas matmuls)
    h = jnp.concatenate(
        [linear(features_list[k], params["fc_w"][k], params["fc_b"][k],
                tile=_row_tile(nums[k]))
         for k in range(n_types)], axis=0)                              # (N, hidden)

    # int8 adjacency stacked over relations, streamed tile-by-tile by the kernels
    adj_all = jnp.stack([a.astype(jnp.int8) for a in adjs], axis=0)     # (G, N, N)

    for l in range(num_layers + 1):
        is_last = (l == num_layers)
        nh = heads[l]
        nf = num_classes if is_last else hid
        hf = nh * nf
        din = h.shape[1]
        pack = _pack_layer(params["gat"], l, nh, nf, din)
        tile = _pick_dst_tile(n_nodes, n_nodes, max(hf, din),
                              max_tile=max_dst_tile)

        # per-relation linear transform + attention score projections
        z_all, el_all, er_all = project_layer(
            h, pack["W"], pack["AL"], pack["AR"],
            num_heads=nh, out_feats=nf, tile=tile)

        # attention + aggregation + residual/bias/act + fused relation combine
        w_node = w_soft[type_id, l, :]                                  # (N, G) glue
        h = gat_combine_layer(
            h, z_all, el_all, er_all, adj_all, pack["bias"], w_node, pack["res_w"],
            num_heads=nh, out_feats=nf, negative_slope=slope,
            apply_elu=not is_last, res_mode=pack["res_mode"],
            mean_heads=is_last, tile_dst=tile)

    return h                                                            # (N, C)


# ----------------------------------------------------------------------------
# Pure-JAX reference (same math, f32, no Pallas) for correctness check
# ----------------------------------------------------------------------------
def ref_gat(h, adj, W, al, ar, bias, res_w, nh, nf, slope, elu):
    n = h.shape[0]
    z = (h @ W).reshape(n, nh, nf)
    el = jnp.sum(z * al[None], axis=-1)                  # (N, H) src scores
    er = jnp.sum(z * ar[None], axis=-1)                  # (N, H) dst scores
    e = er[:, None, :] + el[None, :, :]                  # (dst, src, H)
    e = jnp.where(e >= 0, e, slope * e)
    scores = jnp.where(adj[:, :, None] > 0, e, -1e30)
    scores = scores - scores.max(axis=1, keepdims=True)
    p = jnp.exp(scores)
    alpha = p / p.sum(axis=1, keepdims=True)
    out = jnp.einsum("dsh,shf->dhf", alpha, z)
    rst = out + (h @ res_w).reshape(n, nh, nf) + bias.reshape(1, nh, nf)
    if elu:
        rst = jnp.where(rst > 0, rst, jnp.exp(rst) - 1.0)
    return rst.reshape(n, nh * nf)


def ref_forward(features_list, adjs, params, cfg):
    nums = [f.shape[0] for f in features_list]
    n_types, n_graphs = len(features_list), len(adjs)
    L, heads = cfg["num_layers"], cfg["heads"]
    hid, C, slope = cfg["num_hidden"], cfg["num_classes"], cfg["negative_slope"]
    w_soft = jax.nn.softmax(params["rel_weights"], axis=2)
    type_id = jnp.concatenate(
        [jnp.full((nums[k],), k, dtype=jnp.int32) for k in range(n_types)], axis=0)
    h = jnp.concatenate(
        [features_list[k] @ params["fc_w"][k] + params["fc_b"][k]
         for k in range(n_types)], 0)
    for l in range(L):
        outs = jnp.stack([
            ref_gat(h, adjs[i], params["gat"][i][l]["W"], params["gat"][i][l]["al"],
                    params["gat"][i][l]["ar"], params["gat"][i][l]["bias"],
                    params["gat"][i][l]["res_w"], heads[l], hid, slope, True)
            for i in range(n_graphs)], 0)
        wn = w_soft[type_id, l, :]
        h = jnp.einsum("gnd,ng->nd", outs, wn)
    outs = jnp.stack([
        ref_gat(h, adjs[i], params["gat"][i][L]["W"], params["gat"][i][L]["al"],
                params["gat"][i][L]["ar"], params["gat"][i][L]["bias"],
                params["gat"][i][L]["res_w"], heads[-1], C, slope, False)
        .reshape(h.shape[0], heads[-1], C).mean(1)
        for i in range(n_graphs)], 0)
    wn = w_soft[type_id, L, :]
    return jnp.einsum("gnc,ng->nc", outs, wn)


# ----------------------------------------------------------------------------
# Deterministic parameter / input construction
# ----------------------------------------------------------------------------
def build(key, cfg, in_dims, nums, n_graphs):
    num_hidden, num_classes = cfg["num_hidden"], cfg["num_classes"]
    num_layers, heads = cfg["num_layers"], cfg["heads"]
    n_types = len(in_dims)
    N = sum(nums)

    keys = iter(jax.random.split(key, 256))

    def nrm(shape, std):
        return (std * jax.random.normal(next(keys), shape)).astype(jnp.float32)

    # inputs
    features_list = [nrm((nums[k], in_dims[k]), 1.0) for k in range(n_types)]

    # relation graphs: dense int8 adjacency with self-loops, adj[dst, src]
    adjs = []
    for _ in range(n_graphs):
        a = (jax.random.uniform(next(keys), (N, N)) < 0.3).astype(jnp.int8)
        adjs.append(jnp.maximum(a, jnp.eye(N, dtype=jnp.int8)))

    # per-type input fc (xavier-normal-ish, gain 1.414), stored as (in, hidden)
    fc_w, fc_b = [], []
    for k in range(n_types):
        std = 1.414 * (2.0 / (in_dims[k] + num_hidden)) ** 0.5
        fc_w.append(nrm((in_dims[k], num_hidden), std))
        fc_b.append(nrm((num_hidden,), 0.1))

    # relation mixing weights (nn.Parameter in the module; init'd randomly here)
    rel_weights = nrm((n_types, num_layers + 1, n_graphs), 0.1)

    # GAT layer parameters per relation graph
    layer_dims = []
    layer_dims.append((num_hidden, num_hidden, heads[0], "none"))          # l = 0
    for l in range(1, num_layers):
        layer_dims.append((num_hidden * heads[l - 1], num_hidden, heads[l], "auto"))
    layer_dims.append((num_hidden * heads[-2], num_classes, heads[-1], "auto"))

    gat = []
    for _ in range(n_graphs):
        layers = []
        for (din, dout, nh, res_kind) in layer_dims:
            std = 1.414 * (2.0 / (din + nh * dout)) ** 0.5
            W = nrm((din, nh * dout), std)
            al = nrm((nh, dout), 0.5)
            ar = nrm((nh, dout), 0.5)
            bias = nrm((nh * dout,), 0.1)
            if res_kind == "none":
                res_w = jnp.zeros((din, nh * dout), jnp.float32)           # residual=False
            elif din == nh * dout:
                res_w = jnp.eye(din, dtype=jnp.float32)                    # identity residual
            else:
                res_w = nrm((din, nh * dout), (2.0 / (din + nh * dout)) ** 0.5)  # res_fc
            layers.append(dict(W=W, al=al, ar=ar, bias=bias, res_w=res_w))
        gat.append(layers)

    params = dict(fc_w=fc_w, fc_b=fc_b, rel_weights=rel_weights, gat=gat)
    return features_list, adjs, params


if __name__ == "__main__":
    cfg = dict(num_hidden=32, num_classes=4, num_layers=2, heads=[2, 2, 2],
               negative_slope=0.2)
    in_dims = [8, 12]       # two node types
    nums = [112, 144]       # nodes per type -> 256 total nodes
    n_graphs = 2            # two relation graphs

    key = jax.random.PRNGKey(0)
    features_list, adjs, params = build(key, cfg, in_dims, nums, n_graphs)

    # max_dst_tile=128 keeps the per-step working set well inside v7x's 64 MiB
    # VMEM and exercises multiple dst tiles per relation in this small test.
    logits = rgat_forward(features_list, adjs, params, cfg, max_dst_tile=128)
    logits = jax.block_until_ready(logits)

    ref = ref_forward(features_list, adjs, params, cfg)
    assert logits.shape == (sum(nums), cfg["num_classes"])
    # bf16 MXU inputs + approx reciprocal in the kernels => compare loosely
    # against the pure-f32 reference (real bugs produce O(1) differences).
    assert jnp.allclose(logits, ref, rtol=5e-2, atol=5e-2), "mismatch vs reference"

    # TODO(synk): dropout (feat_drop / attn_drop) is identity here (eval mode).
    print("KERNEL_OK")
</pallas_src>

<mosaic_0001>
module attributes {stable_mosaic.version = 11 : i64} {
  func.func @linear_kernel(%arg0: i32, %arg1: memref<112x8xf32, #tpu.memory_space<vmem>>, %arg2: memref<8x32xf32, #tpu.memory_space<vmem>>, %arg3: memref<1x32xf32, #tpu.memory_space<vmem>>, %arg4: memref<112x32xf32, #tpu.memory_space<vmem>>) attributes {dimension_semantics = [#tpu.dimension_semantics<parallel>], iteration_bounds = array<i64: 1>, scalar_prefetch = 0 : i64, scratch_operands = 0 : i64, tpu.core_type = #tpu.core_type<tc>, window_params = [{transform_indices = @transform_0, window_bounds = array<i64: 112, 8>}, {pipeline_mode = #tpu.pipeline_mode<synchronous>, transform_indices = @transform_1, window_bounds = array<i64: 8, 32>}, {pipeline_mode = #tpu.pipeline_mode<synchronous>, transform_indices = @transform_2, window_bounds = array<i64: 1, 32>}, {transform_indices = @transform_3, window_bounds = array<i64: 112, 32>}]} {
    %c0 = arith.constant 0 : index
    %c0_0 = arith.constant 0 : index
    %0 = vector.load %arg1[%c0, %c0_0] : memref<112x8xf32, #tpu.memory_space<vmem>>, vector<112x8xf32>
    %c0_1 = arith.constant 0 : index
    %c0_2 = arith.constant 0 : index
    %1 = vector.load %arg2[%c0_1, %c0_2] : memref<8x32xf32, #tpu.memory_space<vmem>>, vector<8x32xf32>
    %cst = arith.constant dense<0.000000e+00> : vector<112x32xf32>
    %2 = tpu.matmul %0, %1, %cst {dimension_numbers = #tpu.dot_dimension_numbers<[1], [0], [0], [1], [0, 0, 1, 1], [], []>} : vector<112x8xf32>, vector<8x32xf32>, vector<112x32xf32> -> vector<112x32xf32>
    %c0_3 = arith.constant 0 : index
    %c0_4 = arith.constant 0 : index
    %3 = vector.load %arg3[%c0_3, %c0_4] : memref<1x32xf32, #tpu.memory_space<vmem>>, vector<1x32xf32>
    %4 = vector.broadcast %3 : vector<1x32xf32> to vector<112x32xf32>
    %5 = arith.addf %2, %4 : vector<112x32xf32>
    %c0_5 = arith.constant 0 : index
    %c0_6 = arith.constant 0 : index
    %6 = vector.load %arg4[%c0_5, %c0_6] : memref<112x32xf32, #tpu.memory_space<vmem>>, vector<112x32xf32>
    tpu.vector_store %arg4[%c0_5, %c0_6], %5 {strides = array<i32>} : memref<112x32xf32, #tpu.memory_space<vmem>>, vector<112x32xf32>,
    return
  }
  func.func @transform_0(%arg0: i32) -> (i32, i32) {
    %c0_i32 = arith.constant 0 : i32
    %c0_i32_0 = arith.constant 0 : i32
    return %arg0, %c0_i32 : i32, i32
  }
  func.func @transform_1(%arg0: i32) -> (i32, i32) {
    %c0_i32 = arith.constant 0 : i32
    %c0_i32_0 = arith.constant 0 : i32
    %c0_i32_1 = arith.constant 0 : i32
    return %c0_i32, %c0_i32_0 : i32, i32
  }
  func.func @transform_2(%arg0: i32) -> (i32, i32) {
    %c0_i32 = arith.constant 0 : i32
    %c0_i32_0 = arith.constant 0 : i32
    %c0_i32_1 = arith.constant 0 : i32
    return %c0_i32, %c0_i32_0 : i32, i32
  }
  func.func @transform_3(%arg0: i32) -> (i32, i32) {
    %c0_i32 = arith.constant 0 : i32
    %c0_i32_0 = arith.constant 0 : i32
    return %arg0, %c0_i32 : i32, i32
  }
}

</mosaic_0001>

<bundles_post_ra>
// kernel: tpu_custom_call.1
= control target key start
LH: loop header
LB: loop body
LE: loop exit
PB: predicated region body
PF: predicated region fallthrough
CT: control target
= control target key end

     0   :  { %vm36_vm0 = vcmask 64512   ;;  %vm214_vm1 = vcmask 261120   ;;  %s426_s1 = inlined_call_operand.vmem [shape: f32[8,32], index: 1, kind: input, shape index: {}]   ;;  %s427_s0 = inlined_call_operand.vmem [shape: f32[112,8], index: 0, kind: input, shape index: {}]   ;;  %s428_s2 = inlined_call_operand.vmem [shape: f32[1,32], index: 2, kind: input, shape index: {}]   ;;  %s429_s3 = inlined_call_operand.vmem [shape: f32[112,32], index: 3, kind: output, shape index: {}]  }
   0x1   :  { %v28_v0 = vld [vmem:[%s426_s1] sm:$0xff]  ;;  %v15_v2 = vld [vmem:[%s427_s0 + $0x8] sm:$0xff]  ;;  %v16_v4 = vld [vmem:[%s427_s0 + $0x10] sm:$0xff] }
   0x2   :  { %v14_v1 = vld [vmem:[%s427_s0] sm:$0xff]  ;;  %263 = vmatprep.subr.mxu0 %v28_v0  ;;  %286 = vmatprep.subr.mxu1 %v28_v0  ;;  %v23_v5 = vld [vmem:[%s427_s0 + $0x48] sm:$0xff]  ;;  %v24_v6 = vld [vmem:[%s427_s0 + $0x50] sm:$0xff] }
   0x3   :  { %265 = vmatprep.mubr.msk.f32.mxu0 %vm36_vm0, %v14_v1  ;;  %v22_v3 = vld [vmem:[%s427_s0 + $0x40] sm:$0xff]  ;;  %264 = vmatpush3.msra.mxu0 %v28_v0  ;;  %v17_v7 = vld [vmem:[%s427_s0 + $0x18] sm:$0xff]  ;;  %v19_v11 = vld [vmem:[%s427_s0 + $0x28] sm:$0xff] }
   0x4   :  { %266 = vmatmul.mubr.msk.f32.vlgmr.msra.gmra.mxu0 %vm36_vm0, %v15_v2  ;;  %287 = vmatpush3.msra.mxu1 %v28_v0  ;;  %v18_v8 = vld [vmem:[%s427_s0 + $0x20] sm:$0xff]  ;;  %v25_v9 = vld [vmem:[%s427_s0 + $0x58] sm:$0xff]  ;;  %v20_v12 = vld [vmem:[%s427_s0 + $0x30] sm:$0xff] }
   0x5   :  { %277 = vmatprep.mubr.msk.f32.mxu1 %vm36_vm0, %v22_v3  ;;  %268 = vmatprep.mubr.msk.f32.mxu0 %vm36_vm0, %v16_v4  ;;  %v26_v10 = vld [vmem:[%s427_s0 + $0x60] sm:$0xff]  ;;  %v27_v13 = vld [vmem:[%s427_s0 + $0x68] sm:$0xff]  ;;  %v21_v14 = vld [vmem:[%s427_s0 + $0x38] sm:$0xff] }
   0x6   :  { %278 = vmatmul.mubr.msk.f32.vlgmr.msra.gmra.mxu1 %vm36_vm0, %v23_v5  ;;  %v233_v15 = vld [vmem:[%s428_s2] ss:$0 sm:$0xff] }
   0x7   :  { %280 = vmatprep.mubr.msk.f32.mxu1 %vm36_vm0, %v24_v6 }
   0x8   :  { %269 = vmatmul.mubr.msk.f32.gmra.mxu0 %vm36_vm0, %v17_v7 }
   0x9   :  { %271 = vmatprep.mubr.msk.f32.mxu0 %vm36_vm0, %v18_v8 }
   0xa   :  { %281 = vmatmul.mubr.msk.f32.gmra.mxu1 %vm36_vm0, %v25_v9 }
   0xb   :  { %283 = vmatprep.mubr.msk.f32.mxu1 %vm36_vm0, %v26_v10 }
   0xc   :  { %272 = vmatmul.mubr.msk.f32.gmra.mxu0 %vm36_vm0, %v19_v11 }
   0xd   :  { %274 = vmatprep.mubr.msk.f32.mxu0 %vm36_vm0, %v20_v12 }
   0xe   :  { %284 = vmatmul.mubr.msk.f32.gmra.mxu1 %vm36_vm0, %v27_v13 }
  0x10   :  { %275 = vmatmul.mubr.msk.f32.gmra.mxu0 %vm36_vm0, %v21_v14 }
  0xc4   :  { %v267_v16 = vpop.f32.mrf.mxu0 }
  0xc5   :  { %v151_v17 = vadd.f32 %v267_v16, %v233_v15 }
  0xc6   :  { %v145_v18 = vpop.f32.mrf.mxu0  ;;  %v279_v19 = vpop.f32.mrf.mxu1 }
  0xc7   :  { %216 = vst.msk [vmem:[%s429_s3 + $0x8] sm:$0xff] %vm214_vm1, %v151_v17  ;;  %v146_v20 = vadd.f32 %v233_v15, %v145_v18  ;;  %v191_v21 = vadd.f32 %v279_v19, %v233_v15 }
  0xc8   :  { %v270_v22 = vpop.f32.mrf.mxu0  ;;  %v185_v23 = vpop.f32.mrf.mxu1 }
  0xc9   :  { %215 = vst.msk [vmem:[%s429_s3] sm:$0xff] %vm214_vm1, %v146_v20  ;;  %224 = vst.msk [vmem:[%s429_s3 + $0x48] sm:$0xff] %vm214_vm1, %v191_v21  ;;  %v161_v24 = vadd.f32 %v270_v22, %v233_v15  ;;  %v186_v25 = vadd.f32 %v233_v15, %v185_v23 }
  0xca   :  { %v155_v26 = vpop.f32.mrf.mxu0  ;;  %v282_v27 = vpop.f32.mrf.mxu1 }
  0xcb   :  { %218 = vst.msk [vmem:[%s429_s3 + $0x18] sm:$0xff] %vm214_vm1, %v161_v24  ;;  %223 = vst.msk [vmem:[%s429_s3 + $0x40] sm:$0xff] %vm214_vm1, %v186_v25  ;;  %v156_v28 = vadd.f32 %v233_v15, %v155_v26  ;;  %v201_v29 = vadd.f32 %v282_v27, %v233_v15 }
  0xcc   :  { %v273_v30 = vpop.f32.mrf.mxu0  ;;  %v195_v31 = vpop.f32.mrf.mxu1 }
  0xcd   :  { %217 = vst.msk [vmem:[%s429_s3 + $0x10] sm:$0xff] %vm214_vm1, %v156_v28  ;;  %226 = vst.msk [vmem:[%s429_s3 + $0x58] sm:$0xff] %vm214_vm1, %v201_v29  ;;  %v171_v32 = vadd.f32 %v273_v30, %v233_v15  ;;  %v196_v33 = vadd.f32 %v233_v15, %v195_v31 }
  0xce   :  { %v165_v34 = vpop.f32.mrf.mxu0  ;;  %v285_v35 = vpop.f32.mrf.mxu1 }
  0xcf   :  { %220 = vst.msk [vmem:[%s429_s3 + $0x28] sm:$0xff] %vm214_vm1, %v171_v32  ;;  %225 = vst.msk [vmem:[%s429_s3 + $0x50] sm:$0xff] %vm214_vm1, %v196_v33  ;;  %v166_v36 = vadd.f32 %v233_v15, %v165_v34  ;;  %v211_v37 = vadd.f32 %v285_v35, %v233_v15 }
  0xd0   :  { %v276_v38 = vpop.f32.mrf.mxu0  ;;  %v205_v39 = vpop.f32.mrf.mxu1 }
  0xd1   :  { %219 = vst.msk [vmem:[%s429_s3 + $0x20] sm:$0xff] %vm214_vm1, %v166_v36  ;;  %228 = vst.msk [vmem:[%s429_s3 + $0x68] sm:$0xff] %vm214_vm1, %v211_v37  ;;  %v181_v40 = vadd.f32 %v276_v38, %v233_v15  ;;  %v206_v41 = vadd.f32 %v233_v15, %v205_v39 }
  0xd2   :  { %v175_v42 = vpop.f32.mrf.mxu0 }
  0xd3   :  { %222 = vst.msk [vmem:[%s429_s3 + $0x38] sm:$0xff] %vm214_vm1, %v181_v40  ;;  %227 = vst.msk [vmem:[%s429_s3 + $0x60] sm:$0xff] %vm214_vm1, %v206_v41  ;;  %v176_v43 = vadd.f32 %v233_v15, %v175_v42 }
  0xd5   :  { %221 = vst.msk [vmem:[%s429_s3 + $0x30] sm:$0xff] %vm214_vm1, %v176_v43 }

</bundles_post_ra>
